<compile_context>
chip_gen: v6e
topology: v6e:2x2x1
jax: 0.10.0
libtpu: 0.0.40
codegen_flags: <defaults>
</compile_context>

<pallas_src>
import functools

import jax
import jax.numpy as jnp
from jax import lax
from jax.experimental import pallas as pl
from jax.experimental.pallas import tpu as pltpu


def _label_smoothing_kernel(pred_ref, lab_ref, out_ref, *, classes, smoothing):
    """Per-row smoothed cross entropy for one (TILE_B, C) block.

    pred_ref: (TILE_B, C) logits (any float dtype, cast to f32 in-kernel).
    lab_ref : (TILE_B, 1) int32 class ids.
    out_ref : (TILE_B, 1) f32 per-row loss (mean over batch is taken outside).
    """
    confidence = 1.0 - smoothing
    smooth_val = smoothing / (classes - 1)

    preds = pred_ref[...].astype(jnp.float32)               # (TB, C)
    lab = lab_ref[...]                                       # (TB, 1) int32

    # Stable log-softmax statistics WITHOUT materializing log_probs:
    #   log_probs        = shifted - lse
    #   sum(log_probs)   = sum(shifted) - C * lse
    #   log_probs[label] = shifted[label] - lse
    m = jnp.max(preds, axis=-1, keepdims=True)               # (TB, 1)
    shifted = preds - m                                      # (TB, C) only live full tile
    lse = jnp.log(jnp.sum(jnp.exp(shifted), axis=-1, keepdims=True))   # (TB, 1)
    sum_shifted = jnp.sum(shifted, axis=-1, keepdims=True)             # (TB, 1)

    class_ids = lax.broadcasted_iota(jnp.int32, shifted.shape, 1)
    shifted_at_label = jnp.sum(jnp.where(class_ids == lab, shifted, 0.0),
                               axis=-1, keepdims=True)                  # (TB, 1)

    lp_at_label = shifted_at_label - lse
    sum_lp = sum_shifted - classes * lse

    # -sum(smooth_labels * log_probs) with one-hot labels collapses to:
    out_ref[...] = (-(confidence - smooth_val) * lp_at_label
                    - smooth_val * sum_lp)


def _round_up(x, m):
    return ((x + m - 1) // m) * m


def _vmem_capacity_bytes():
    """Physical VMEM of the current generation (128 MiB v5e/v6e, 64 MiB v7x)."""
    try:
        info = pltpu.get_tpu_info()
        cap = getattr(info, "vmem_capacity_bytes", None)
        if cap:
            return int(cap)
    except Exception:
        pass
    return 64 * 1024 * 1024   # conservative fallback (v7x per-TensorCore VMEM)


def label_smoothing_loss_from_ids(predictions, label_ids, *, classes,
                                  smoothing=0.0, tile_b=None):
    """Optimized path: predictions (B, C) float + int32 label ids (B,). Scalar out."""
    if classes < 2:
        raise ValueError("LabelSmoothingLoss needs classes >= 2 "
                         "(smoothing / (classes - 1) is undefined otherwise).")
    B, C = predictions.shape
    assert C == classes, (C, classes)
    label_ids = label_ids.reshape(B, 1).astype(jnp.int32)

    itemsize = predictions.dtype.itemsize
    sub = {4: 8, 2: 16, 1: 32}.get(itemsize, 8)   # sublane multiple for the dtype

    # Generation-aware VMEM budget (leave headroom for compiler scratch).
    vmem_capacity = _vmem_capacity_bytes()
    vmem_limit = min((3 * vmem_capacity) // 4, 96 * 1024 * 1024)
    vmem_budget = max(8 * 1024 * 1024, vmem_limit - 8 * 1024 * 1024)

    # Per-row VMEM footprint of one block set, with 128-lane padding:
    #   logits tile        : round_up(C, 128) * itemsize
    #   label block (i32)  : 1 lane padded to 128 -> 512 B
    #   per-row out (f32)  : 1 lane padded to 128 -> 512 B
    c_pad = _round_up(C, 128)
    bytes_per_row = c_pad * itemsize + 2 * 128 * 4

    if tile_b is None:
        cap = vmem_budget // (2 * bytes_per_row)          # double-buffered
        cap = max(sub, (cap // sub) * sub)
        if B > 2 * sub:
            # Keep >= ~4 grid steps: megacore sharding on v7x needs >= 2 and the
            # BlockSpec pipeline needs something to overlap DMA with compute.
            cap = min(cap, max(sub, _round_up(-(-B // 4), sub)))
        tile_b = min(cap, _round_up(B, sub))
    else:
        tile_b = max(sub, _round_up(tile_b, sub))

    grid = (pl.cdiv(B, tile_b),)
    kernel = functools.partial(_label_smoothing_kernel,
                               classes=classes, smoothing=float(smoothing))
    per_row = pl.pallas_call(
        kernel,
        out_shape=jax.ShapeDtypeStruct((B, 1), jnp.float32),
        grid=grid,
        in_specs=[
            pl.BlockSpec((tile_b, C), lambda i: (i, 0)),   # logits tile
            pl.BlockSpec((tile_b, 1), lambda i: (i, 0)),   # label ids tile
        ],
        out_specs=pl.BlockSpec((tile_b, 1), lambda i: (i, 0)),
        compiler_params=pltpu.CompilerParams(
            dimension_semantics=("parallel",),
            vmem_limit_bytes=int(vmem_limit),
        ),
    )(predictions, label_ids)
    # Mean over the *total* batch, hoisted out of the kernel. The ragged last
    # tile is handled by Pallas' masked partial-block store (padded rows never
    # reach the (B, 1) output), so no extra masking is needed here.
    return jnp.sum(per_row) / jnp.float32(B)


def label_smoothing_loss(predictions, labels, *, classes, smoothing=0.0,
                         tile_b=None):
    """Pallas implementation of LabelSmoothingLoss.forward (dense one-hot labels).

    NOTE: this entry point still reads the dense (B, C) one-hot tensor once
    (XLA argmax) before the kernel; prefer `label_smoothing_loss_from_ids`
    (or push the argmax upstream) to realize the full HBM-bandwidth saving.
    """
    # TODO(synk): soft (non one-hot) label distributions would require a
    # dense-label kernel path; EEGFormer feeds exact one-hot labels, so the
    # argmax -> class-id rewrite is lossless.
    label_ids = jnp.argmax(labels, axis=-1).astype(jnp.int32)
    return label_smoothing_loss_from_ids(predictions, label_ids,
                                         classes=classes, smoothing=smoothing,
                                         tile_b=tile_b)


def _reference(predictions, labels, *, classes, smoothing):
    confidence = 1.0 - smoothing
    log_probs = jax.nn.log_softmax(predictions.astype(jnp.float32), axis=-1)
    smooth_labels = labels * confidence + (1.0 - labels) * (smoothing / (classes - 1))
    return jnp.mean(jnp.sum(-smooth_labels * log_probs, axis=-1))


if __name__ == "__main__":
    key = jax.random.PRNGKey(0)
    k1, k2, k3, k4, k5, k6 = jax.random.split(key, 6)

    # --- Test 1: shapes matching the EEGFormer classification head. ---
    batch, classes, smoothing = 8, 4, 0.1
    predictions = jax.random.normal(k1, (batch, classes), dtype=jnp.float32)
    label_ids = jax.random.randint(k2, (batch,), 0, classes)
    labels = jax.nn.one_hot(label_ids, classes, dtype=jnp.float32)

    loss = label_smoothing_loss(predictions, labels,
                                classes=classes, smoothing=smoothing)
    loss = jax.block_until_ready(loss)
    ref = _reference(predictions, labels, classes=classes, smoothing=smoothing)
    assert jnp.allclose(loss, ref, atol=1e-5, rtol=1e-5), (loss, ref)

    # --- Test 2: multi-tile grid with a ragged (partial) last batch tile. ---
    batch2, classes2, smoothing2 = 37, 5, 0.2
    predictions2 = jax.random.normal(k3, (batch2, classes2), dtype=jnp.float32)
    label_ids2 = jax.random.randint(k4, (batch2,), 0, classes2)
    labels2 = jax.nn.one_hot(label_ids2, classes2, dtype=jnp.float32)

    loss2 = label_smoothing_loss(predictions2, labels2, classes=classes2,
                                 smoothing=smoothing2, tile_b=16)
    loss2 = jax.block_until_ready(loss2)
    ref2 = _reference(predictions2, labels2, classes=classes2,
                      smoothing=smoothing2)
    assert jnp.allclose(loss2, ref2, atol=1e-5, rtol=1e-5), (loss2, ref2)

    # --- Test 3: bf16 logits (kernel casts to f32 internally). ---
    batch3, classes3, smoothing3 = 16, 4, 0.1
    predictions3 = jax.random.normal(k5, (batch3, classes3),
                                     dtype=jnp.float32).astype(jnp.bfloat16)
    label_ids3 = jax.random.randint(k6, (batch3,), 0, classes3).astype(jnp.int32)
    labels3 = jax.nn.one_hot(label_ids3, classes3, dtype=jnp.float32)

    loss3 = label_smoothing_loss_from_ids(predictions3, label_ids3,
                                          classes=classes3,
                                          smoothing=smoothing3)
    loss3 = jax.block_until_ready(loss3)
    ref3 = _reference(predictions3, labels3, classes=classes3,
                      smoothing=smoothing3)
    assert jnp.allclose(loss3, ref3, atol=1e-3, rtol=1e-3), (loss3, ref3)

    print("KERNEL_OK")
</pallas_src>

<mosaic_0001>
module attributes {stable_mosaic.version = 11 : i64} {
  func.func @_label_smoothing_kernel(%arg0: i32, %arg1: memref<8x4xf32, #tpu.memory_space<vmem>>, %arg2: memref<8x1xi32, #tpu.memory_space<vmem>>, %arg3: memref<8x1xf32, #tpu.memory_space<vmem>>) attributes {dimension_semantics = [#tpu.dimension_semantics<parallel>], iteration_bounds = array<i64: 1>, scalar_prefetch = 0 : i64, scratch_operands = 0 : i64, tpu.core_type = #tpu.core_type<tc>, window_params = [{transform_indices = @transform_0, window_bounds = array<i64: 8, 4>}, {transform_indices = @transform_1, window_bounds = array<i64: 8, 1>}, {transform_indices = @transform_2, window_bounds = array<i64: 8, 1>}]} {
    %c0 = arith.constant 0 : index
    %c0_0 = arith.constant 0 : index
    %0 = vector.load %arg1[%c0, %c0_0] : memref<8x4xf32, #tpu.memory_space<vmem>>, vector<8x4xf32>
    %c0_1 = arith.constant 0 : index
    %c0_2 = arith.constant 0 : index
    %1 = vector.load %arg2[%c0_1, %c0_2] : memref<8x1xi32, #tpu.memory_space<vmem>>, vector<8x1xi32>
    %cst = arith.constant dense<0xFF800000> : vector<8xf32>
    %2 = vector.multi_reduction <maximumf>, %0, %cst [1] : vector<8x4xf32> to vector<8xf32>
    %3 = vector.shape_cast %2 : vector<8xf32> to vector<8x1xf32>
    %4 = vector.broadcast %3 : vector<8x1xf32> to vector<8x4xf32>
    %5 = arith.subf %0, %4 : vector<8x4xf32>
    %6 = math.exp %5 : vector<8x4xf32>
    %cst_3 = arith.constant dense<0.000000e+00> : vector<8xf32>
    %7 = vector.multi_reduction <add>, %6, %cst_3 [1] : vector<8x4xf32> to vector<8xf32>
    %8 = vector.shape_cast %7 : vector<8xf32> to vector<8x1xf32>
    %9 = math.log %8 : vector<8x1xf32>
    %cst_4 = arith.constant dense<0.000000e+00> : vector<8xf32>
    %10 = vector.multi_reduction <add>, %5, %cst_4 [1] : vector<8x4xf32> to vector<8xf32>
    %11 = vector.shape_cast %10 : vector<8xf32> to vector<8x1xf32>
    %12 = tpu.iota {dimensions = array<i32: 1>} : vector<8x4xi32>
    %13 = vector.broadcast %1 : vector<8x1xi32> to vector<8x4xi32>
    %14 = arith.cmpi eq, %12, %13 : vector<8x4xi32>
    %cst_5 = arith.constant 0.000000e+00 : f32
    %15 = vector.broadcast %cst_5 : f32 to vector<8x4xf32>
    %16 = arith.select %14, %5, %15 : vector<8x4xi1>, vector<8x4xf32>
    %cst_6 = arith.constant dense<0.000000e+00> : vector<8xf32>
    %17 = vector.multi_reduction <add>, %16, %cst_6 [1] : vector<8x4xf32> to vector<8xf32>
    %18 = vector.shape_cast %17 : vector<8xf32> to vector<8x1xf32>
    %19 = arith.subf %18, %9 : vector<8x1xf32>
    %cst_7 = arith.constant 4.000000e+00 : f32
    %20 = vector.broadcast %cst_7 : f32 to vector<8x1xf32>
    %21 = arith.mulf %20, %9 : vector<8x1xf32>
    %22 = arith.subf %11, %21 : vector<8x1xf32>
    %cst_8 = arith.constant -0.866666674 : f32
    %23 = vector.broadcast %cst_8 : f32 to vector<8x1xf32>
    %24 = arith.mulf %23, %19 : vector<8x1xf32>
    %cst_9 = arith.constant 0.0333333351 : f32
    %25 = vector.broadcast %cst_9 : f32 to vector<8x1xf32>
    %26 = arith.mulf %25, %22 : vector<8x1xf32>
    %27 = arith.subf %24, %26 : vector<8x1xf32>
    %c0_10 = arith.constant 0 : index
    %c0_11 = arith.constant 0 : index
    %28 = vector.load %arg3[%c0_10, %c0_11] : memref<8x1xf32, #tpu.memory_space<vmem>>, vector<8x1xf32>
    tpu.vector_store %arg3[%c0_10, %c0_11], %27 {strides = array<i32>} : memref<8x1xf32, #tpu.memory_space<vmem>>, vector<8x1xf32>,
    return
  }
  func.func @transform_0(%arg0: i32) -> (i32, i32) {
    %c0_i32 = arith.constant 0 : i32
    %c0_i32_0 = arith.constant 0 : i32
    return %arg0, %c0_i32 : i32, i32
  }
  func.func @transform_1(%arg0: i32) -> (i32, i32) {
    %c0_i32 = arith.constant 0 : i32
    %c0_i32_0 = arith.constant 0 : i32
    return %arg0, %c0_i32 : i32, i32
  }
  func.func @transform_2(%arg0: i32) -> (i32, i32) {
    %c0_i32 = arith.constant 0 : i32
    %c0_i32_0 = arith.constant 0 : i32
    return %arg0, %c0_i32 : i32, i32
  }
}

</mosaic_0001>

<bundles_post_ra>
// kernel: tpu_custom_call.1
= control target key start
LH: loop header
LB: loop body
LE: loop exit
PB: predicated region body
PF: predicated region fallthrough
CT: control target
= control target key end

     0   :  { %vm13_vm0 = vcmask 31744   ;;  %v56_v1 = vmov 0   ;;  %v28_v7 = vlaneseq  ;;  %vm44_vm2 = vcmask 7168   ;;  %s85_s0 = inlined_call_operand.vmem [shape: f32[8,4], index: 0, kind: input, shape index: {}]   ;;  %s86_s1 = inlined_call_operand.vmem [shape: s32[8,1], index: 1, kind: input, shape index: {}]   ;;  %s87_s2 = inlined_call_operand.vmem [shape: f32[8,1], index: 2, kind: output, shape index: {}]  }
   0x1   :  { %v11_v0 = vld [vmem:[%s85_s0] sm:$0xff]  ;;  %51 = vset.pattern.permute.xlu0 %v56_v1 }
   0x2   :  { %v14_v2 = vsel %vm13_vm0, %v11_v0, -inf  ;;  %v12_v3 = vld [vmem:[%s86_s1] sm:$0xff]  ;;  %v29_v8 = vand.u32 127, %v28_v7 }
   0x3   :  { %15 = vmax.xlane.f32.xlu0 %v14_v2 }
  0x19   :  { %31 = vperm.xlu0 %51, %v12_v3  }
  0x8c   :  { %v16_v4 = vpop.xlane.xlu0 %15 }
  0x8d   :  { %v17_v5 = vsub.f32 %v11_v0, %v16_v4 }
  0x8f   :  { %v18_v6 = vmul.f32 1.442695, %v17_v5  ;;  %v25_v12 = vsel %vm13_vm0, %v17_v5, 0.0 }
  0x91   :  { %52 = vpow2.f32 %v18_v6 }
  0x94   :  { %v32_v10 = vpop.permute.xlu0 %31 }
  0x95   :  { %vm33_vm1 = vcmp.eq.s32.totalorder %v29_v8, %v32_v10 }
  0x96   :  { %v34_v13 = vsel %vm33_vm1, %v17_v5, 0.0 }
  0x97   :  { %v35_v14 = vsel %vm13_vm0, %v34_v13, 0.0 }
  0x9e   :  { %v53_v9 = vpop.eup %52 }
  0x9f   :  { %v20_v11 = vsel %vm13_vm0, %v53_v9, 0.0 }
  0xa0   :  { %21 = vadd.xlane.f32.xlu1 %v20_v11 }
  0xa4   :  { %26 = vadd.xlane.f32.xlu1 %v25_v12 }
  0xa8   :  { %36 = vadd.xlane.f32.xlu1 %v35_v14 }
 0x129   :  { %v22_v15 = vpop.xlane.xlu1 %21 }
 0x12a   :  { %54 = vlog2.f32 %v22_v15 }
 0x12d   :  { %v27_v16 = vpop.xlane.xlu1 %26 }
 0x131   :  { %v37_v19 = vpop.xlane.xlu1 %36 }
 0x137   :  { %v55_v17 = vpop.eup %54 }
 0x138   :  { %v24_v18 = vmul.f32 0.6931472, %v55_v17 }
 0x13a   :  { %v39_v20 = vmul.f32 4.0, %v24_v18  ;;  %v38_v21 = vsub.f32 %v37_v19, %v24_v18 }
 0x13c   :  { %v40_v22 = vsub.f32 %v27_v16, %v39_v20  ;;  %v41_v24 = vmul.f32 -0.8666667, %v38_v21 }
 0x13e   :  { %v42_v23 = vmul.f32 0.033333335, %v40_v22 }
 0x140   :  { %v43_v25 = vsub.f32 %v41_v24, %v42_v23 }
 0x142   :  { %45 = vst.msk [vmem:[%s87_s2] sm:$0xff] %vm44_vm2, %v43_v25 }

</bundles_post_ra>
